<compile_context>
chip_gen: v6e
topology: v6e:2x2x1
jax: 0.10.0
libtpu: 0.0.40
codegen_flags: <defaults>
</compile_context>

<pallas_src>
import functools
from typing import NamedTuple, Tuple

import jax
import jax.numpy as jnp
from jax.experimental import pallas as pl
from jax.experimental.pallas import tpu as pltpu

LN_EPS = 1e-5
LANE = 128


def _round_up(v, m):
    return (v + m - 1) // m * m


def _pad2(a, rows, cols):
    return jnp.pad(a, ((0, rows - a.shape[0]), (0, cols - a.shape[1])))


class Geometry(NamedTuple):
    input_dim: int
    hidden_dims: Tuple[int, ...]
    out_dim: int
    din_pad: int
    hid_pad: Tuple[int, ...]
    dout_pad: int
    compute_dtype: str


def pack_params(input_dim, hidden_params, final_params, compute_dtype=jnp.bfloat16):
    """Pad all parameters to lane-dense (multiple-of-128) shapes and cast the
    matmul weights to the compute dtype ONCE, outside the per-call forward."""
    hidden_dims = tuple(int(p["w"].shape[1]) for p in hidden_params)
    out_dim = int(final_params["w"].shape[1])
    din_pad = _round_up(input_dim, LANE)
    hid_pad = tuple(_round_up(d, LANE) for d in hidden_dims)
    dout_pad = _round_up(out_dim, LANE)
    in_dims = (din_pad,) + hid_pad

    packed = []
    for li, prm in enumerate(hidden_params):
        dop = hid_pad[li]
        packed.append(_pad2(prm["w"], in_dims[li], dop).astype(compute_dtype))
        packed.append(_pad2(prm["b"].reshape(1, -1), 1, dop))       # f32
        packed.append(_pad2(prm["gamma"].reshape(1, -1), 1, dop))   # f32 (0 in pad lanes)
        packed.append(_pad2(prm["beta"].reshape(1, -1), 1, dop))    # f32 (0 in pad lanes)
    packed.append(_pad2(final_params["w"], in_dims[-1], dout_pad).astype(compute_dtype))
    packed.append(_pad2(final_params["b"].reshape(1, -1), 1, dout_pad))

    geom = Geometry(input_dim, hidden_dims, out_dim, din_pad, hid_pad, dout_pad,
                    jnp.dtype(compute_dtype).name)
    return tuple(packed), geom


def _choose_tb(b_min, row_mult):
    """Pick a batch tile: <=256 rows, minimal padding waste, prefer >=2 grid
    steps so the two TensorCores on v7x can split the batch."""
    if b_min <= 2 * row_mult:
        return b_min
    half = _round_up((b_min + 1) // 2, row_mult)
    cands = {256, 128, half, b_min}
    cands = [c for c in cands if row_mult <= c <= max(b_min, row_mult)] or [b_min]

    def key(tb):
        bpad = _round_up(b_min, tb)
        steps = bpad // tb
        waste = bpad - b_min
        return (0 if steps >= 2 else 1, waste, -min(tb, 256))

    return min(cands, key=key)


def _make_fused_kernel(n_hidden, true_hidden_dims):
    """true_hidden_dims[i] = real (unpadded) width of hidden layer i output."""

    def kernel(x_ref, *refs):
        param_refs = refs[:-2]
        out_ref, feat_ref = refs[-2], refs[-1]

        h = x_ref[...]                     # [TB, Din_pad] in compute dtype
        act = None
        p = 0
        for li in range(n_hidden):
            w_ref, b_ref, g_ref, be_ref = param_refs[p:p + 4]
            p += 4
            # Linear on the MXU, f32 accumulate. Padded rows/cols of W and
            # padded lanes of bias are zero, so padded lanes of z are exactly 0.
            z = jnp.dot(h, w_ref[...], preferred_element_type=jnp.float32)
            z = z + b_ref[...]
            # LayerNorm over the true width. Full-lane sums equal true-lane
            # sums because padded lanes of z are zero; variance via
            # E[z^2] - mean^2 (no mask / extra temporaries).
            d = true_hidden_dims[li]
            inv_d = 1.0 / d
            mean = jnp.sum(z, axis=-1, keepdims=True) * inv_d
            sumsq = jnp.sum(z * z, axis=-1, keepdims=True) * inv_d
            var = jnp.maximum(sumsq - mean * mean, 0.0)
            zn = (z - mean) * jax.lax.rsqrt(var + LN_EPS)
            # gamma/beta (zero in padded lanes => padded act lanes stay 0) + ReLU.
            act = jnp.maximum(zn * g_ref[...] + be_ref[...], 0.0)
            h = act.astype(x_ref.dtype)    # back to compute dtype for next MXU pass

        feat_ref[...] = act.astype(feat_ref.dtype)

        # Final Linear, fused (no extra launch, lane-dense padded store).
        wf_ref, bf_ref = param_refs[p], param_refs[p + 1]
        out = jnp.dot(h, wf_ref[...], preferred_element_type=jnp.float32)
        out_ref[...] = (out + bf_ref[...]).astype(out_ref.dtype)

    return kernel


@functools.partial(jax.jit, static_argnames=("geom",))
def mlp_layernorm_forward_packed(x, packed, geom):
    """Fused forward pass on pre-packed params; returns (out, features)."""
    compute_dtype = jnp.dtype(geom.compute_dtype)
    B = x.shape[0]
    n_hidden = len(geom.hidden_dims)

    # ---- padded geometry: lane-dense last dims, sublane-aligned batch tile ----
    row_mult = 16 if compute_dtype.itemsize == 2 else 8
    b_min = _round_up(max(B, row_mult), row_mult)
    TB = _choose_tb(b_min, row_mult)
    B_pad = _round_up(b_min, TB)

    x_p = _pad2(x, B_pad, geom.din_pad).astype(compute_dtype)

    # Constant-index params: single-buffered, stay resident in VMEM.
    const_specs = [
        pl.BlockSpec(arr.shape, lambda i: (0, 0), pipeline_mode=pl.Buffered(1))
        for arr in packed
    ]

    # ---- VMEM budget (single-buffered params + double-buffered I/O tiles) ----
    itemsize = compute_dtype.itemsize
    param_bytes = sum(int(a.size) * a.dtype.itemsize for a in packed)
    x_tile_bytes = 2 * TB * geom.din_pad * itemsize
    out_tile_bytes = 2 * TB * (geom.dout_pad + geom.hid_pad[-1]) * 4
    max_w = max(geom.hid_pad + (geom.din_pad, geom.dout_pad))
    interm_bytes = 6 * TB * max_w * 4     # live f32 temporaries inside a layer
    vmem_limit = int(1.25 * (param_bytes + x_tile_bytes + out_tile_bytes + interm_bytes))
    vmem_limit = max(vmem_limit, 32 * 1024 * 1024)
    vmem_limit = min(vmem_limit, 100 * 1024 * 1024)

    # ---- cost estimate for XLA scheduling around the fused call ----
    dims = (geom.din_pad,) + geom.hid_pad + (geom.dout_pad,)
    flops = 2 * B_pad * sum(dims[i] * dims[i + 1] for i in range(len(dims) - 1))
    bytes_accessed = (B_pad * geom.din_pad * itemsize + param_bytes
                      + B_pad * (geom.dout_pad + geom.hid_pad[-1]) * 4)
    cost = pl.CostEstimate(flops=int(flops),
                           transcendentals=int(B_pad * n_hidden),
                           bytes_accessed=int(bytes_accessed))

    kernel = _make_fused_kernel(n_hidden, geom.hidden_dims)

    out_p, feat_p = pl.pallas_call(
        kernel,
        grid=(B_pad // TB,),
        in_specs=[pl.BlockSpec((TB, geom.din_pad), lambda i: (i, 0))] + const_specs,
        out_specs=(pl.BlockSpec((TB, geom.dout_pad), lambda i: (i, 0)),
                   pl.BlockSpec((TB, geom.hid_pad[-1]), lambda i: (i, 0))),
        out_shape=(jax.ShapeDtypeStruct((B_pad, geom.dout_pad), jnp.float32),
                   jax.ShapeDtypeStruct((B_pad, geom.hid_pad[-1]), jnp.float32)),
        compiler_params=pltpu.CompilerParams(
            dimension_semantics=("parallel",),
            vmem_limit_bytes=vmem_limit),
        cost_estimate=cost,
    )(x_p, *packed)

    return out_p[:B, :geom.out_dim], feat_p[:B, :geom.hidden_dims[-1]]


def init_params(key, input_dim, hidden_dims, out_dim):
    """Deterministic parameter init (mimics nn.Linear uniform init shapes)."""
    params = []
    dims = [input_dim] + list(hidden_dims)
    for i in range(len(hidden_dims)):
        din, dout = dims[i], dims[i + 1]
        key, kw, kb = jax.random.split(key, 3)
        bound = 1.0 / jnp.sqrt(din)
        w = jax.random.uniform(kw, (din, dout), jnp.float32, -bound, bound)
        b = jax.random.uniform(kb, (dout,), jnp.float32, -bound, bound)
        gamma = jnp.ones((dout,), jnp.float32)
        beta = jnp.zeros((dout,), jnp.float32)
        params.append(dict(w=w, b=b, gamma=gamma, beta=beta))
    din, dout = hidden_dims[-1], out_dim
    key, kw, kb = jax.random.split(key, 3)
    bound = 1.0 / jnp.sqrt(din)
    w = jax.random.uniform(kw, (din, dout), jnp.float32, -bound, bound)
    b = jax.random.uniform(kb, (dout,), jnp.float32, -bound, bound)
    final = dict(w=w, b=b)
    return params, final


def _reference(x, hidden_params, final_params, compute_dtype=jnp.float32):
    """Pure-JAX reference; optionally emulates bf16 matmul operands."""
    def mm(a, w):
        return jax.lax.dot_general(
            a.astype(compute_dtype), w.astype(compute_dtype),
            (((1,), (0,)), ((), ())),
            precision=jax.lax.Precision.HIGHEST,
            preferred_element_type=jnp.float32)

    h = x
    for p in hidden_params:
        z = mm(h, p["w"]) + p["b"]
        mean = jnp.mean(z, axis=-1, keepdims=True)
        var = jnp.mean((z - mean) ** 2, axis=-1, keepdims=True)
        zn = (z - mean) * jax.lax.rsqrt(var + LN_EPS)
        h = jnp.maximum(zn * p["gamma"] + p["beta"], 0.0)
    features = h
    out = mm(features, final_params["w"]) + final_params["b"]
    return out, features


if __name__ == "__main__":
    # Small config: input_dim=32, hidden_dims=[64, 64], out_dim=16, batch=8
    input_dim, hidden_dims, out_dim = 32, [64, 64], 16
    batch = 8

    key = jax.random.PRNGKey(0)
    key, kx = jax.random.split(key)
    x = jax.random.normal(kx, (batch, input_dim), jnp.float32)

    hidden_params, final_params = init_params(key, input_dim, hidden_dims, out_dim)

    # Pack/pad/cast parameters ONCE (hoisted out of the per-call forward).
    packed, geom = pack_params(input_dim, hidden_params, final_params,
                               compute_dtype=jnp.bfloat16)

    out, features = mlp_layernorm_forward_packed(x, packed, geom)
    out = jax.block_until_ready(out)
    features = jax.block_until_ready(features)

    assert out.shape == (batch, out_dim)
    assert features.shape == (batch, hidden_dims[-1])
    assert out.dtype == jnp.float32 and features.dtype == jnp.float32

    # Semantic check vs. exact f32 module math (loose: matmul operands are bf16).
    ref_out, ref_feat = _reference(x, hidden_params, final_params, jnp.float32)
    assert jnp.allclose(out, ref_out, atol=5e-2, rtol=5e-2)
    assert jnp.allclose(features, ref_feat, atol=5e-2, rtol=5e-2)

    # Implementation check vs. bf16-operand / f32-accumulate reference (tight).
    ref_out_bf, ref_feat_bf = _reference(x, hidden_params, final_params, jnp.bfloat16)
    assert jnp.allclose(out, ref_out_bf, atol=1e-3, rtol=1e-3)
    assert jnp.allclose(features, ref_feat_bf, atol=1e-3, rtol=1e-3)

    print("KERNEL_OK")
</pallas_src>

<mosaic_0001>
module attributes {stable_mosaic.version = 11 : i64} {
  func.func @kernel(%arg0: i32, %arg1: memref<16x128xbf16, #tpu.memory_space<vmem>>, %arg2: memref<128x128xbf16, #tpu.memory_space<vmem>>, %arg3: memref<1x128xf32, #tpu.memory_space<vmem>>, %arg4: memref<1x128xf32, #tpu.memory_space<vmem>>, %arg5: memref<1x128xf32, #tpu.memory_space<vmem>>, %arg6: memref<128x128xbf16, #tpu.memory_space<vmem>>, %arg7: memref<1x128xf32, #tpu.memory_space<vmem>>, %arg8: memref<1x128xf32, #tpu.memory_space<vmem>>, %arg9: memref<1x128xf32, #tpu.memory_space<vmem>>, %arg10: memref<128x128xbf16, #tpu.memory_space<vmem>>, %arg11: memref<1x128xf32, #tpu.memory_space<vmem>>, %arg12: memref<16x128xf32, #tpu.memory_space<vmem>>, %arg13: memref<16x128xf32, #tpu.memory_space<vmem>>) attributes {dimension_semantics = [#tpu.dimension_semantics<parallel>], iteration_bounds = array<i64: 1>, scalar_prefetch = 0 : i64, scratch_operands = 0 : i64, tpu.core_type = #tpu.core_type<tc>, window_params = [{transform_indices = @transform_0, window_bounds = array<i64: 16, 128>}, {pipeline_mode = #tpu.pipeline_mode<synchronous>, transform_indices = @transform_1, window_bounds = array<i64: 128, 128>}, {pipeline_mode = #tpu.pipeline_mode<synchronous>, transform_indices = @transform_2, window_bounds = array<i64: 1, 128>}, {pipeline_mode = #tpu.pipeline_mode<synchronous>, transform_indices = @transform_3, window_bounds = array<i64: 1, 128>}, {pipeline_mode = #tpu.pipeline_mode<synchronous>, transform_indices = @transform_4, window_bounds = array<i64: 1, 128>}, {pipeline_mode = #tpu.pipeline_mode<synchronous>, transform_indices = @transform_5, window_bounds = array<i64: 128, 128>}, {pipeline_mode = #tpu.pipeline_mode<synchronous>, transform_indices = @transform_6, window_bounds = array<i64: 1, 128>}, {pipeline_mode = #tpu.pipeline_mode<synchronous>, transform_indices = @transform_7, window_bounds = array<i64: 1, 128>}, {pipeline_mode = #tpu.pipeline_mode<synchronous>, transform_indices = @transform_8, window_bounds = array<i64: 1, 128>}, {pipeline_mode = #tpu.pipeline_mode<synchronous>, transform_indices = @transform_9, window_bounds = array<i64: 128, 128>}, {pipeline_mode = #tpu.pipeline_mode<synchronous>, transform_indices = @transform_10, window_bounds = array<i64: 1, 128>}, {transform_indices = @transform_11, window_bounds = array<i64: 16, 128>}, {transform_indices = @transform_12, window_bounds = array<i64: 16, 128>}]} {
    %c0 = arith.constant 0 : index
    %c0_0 = arith.constant 0 : index
    %0 = vector.load %arg1[%c0, %c0_0] : memref<16x128xbf16, #tpu.memory_space<vmem>>, vector<16x128xbf16>
    %c0_1 = arith.constant 0 : index
    %c0_2 = arith.constant 0 : index
    %1 = vector.load %arg2[%c0_1, %c0_2] : memref<128x128xbf16, #tpu.memory_space<vmem>>, vector<128x128xbf16>
    %cst = arith.constant dense<0.000000e+00> : vector<16x128xf32>
    %2 = tpu.matmul %0, %1, %cst {dimension_numbers = #tpu.dot_dimension_numbers<[1], [0], [0], [1], [0, 0, 1, 1], [], []>} : vector<16x128xbf16>, vector<128x128xbf16>, vector<16x128xf32> -> vector<16x128xf32>
    %c0_3 = arith.constant 0 : index
    %c0_4 = arith.constant 0 : index
    %3 = vector.load %arg3[%c0_3, %c0_4] : memref<1x128xf32, #tpu.memory_space<vmem>>, vector<1x128xf32>
    %4 = vector.broadcast %3 : vector<1x128xf32> to vector<16x128xf32>
    %5 = arith.addf %2, %4 : vector<16x128xf32>
    %cst_5 = arith.constant dense<0.000000e+00> : vector<16xf32>
    %6 = vector.multi_reduction <add>, %5, %cst_5 [1] : vector<16x128xf32> to vector<16xf32>
    %7 = vector.shape_cast %6 : vector<16xf32> to vector<16x1xf32>
    %cst_6 = arith.constant 1.562500e-02 : f32
    %8 = vector.broadcast %cst_6 : f32 to vector<16x1xf32>
    %9 = arith.mulf %7, %8 : vector<16x1xf32>
    %10 = arith.mulf %5, %5 : vector<16x128xf32>
    %cst_7 = arith.constant dense<0.000000e+00> : vector<16xf32>
    %11 = vector.multi_reduction <add>, %10, %cst_7 [1] : vector<16x128xf32> to vector<16xf32>
    %12 = vector.shape_cast %11 : vector<16xf32> to vector<16x1xf32>
    %cst_8 = arith.constant 1.562500e-02 : f32
    %13 = vector.broadcast %cst_8 : f32 to vector<16x1xf32>
    %14 = arith.mulf %12, %13 : vector<16x1xf32>
    %15 = arith.mulf %9, %9 : vector<16x1xf32>
    %16 = arith.subf %14, %15 : vector<16x1xf32>
    %cst_9 = arith.constant 0.000000e+00 : f32
    %17 = vector.broadcast %cst_9 : f32 to vector<16x1xf32>
    %18 = arith.maximumf %16, %17 : vector<16x1xf32>
    %19 = vector.broadcast %9 : vector<16x1xf32> to vector<16x128xf32>
    %20 = arith.subf %5, %19 : vector<16x128xf32>
    %cst_10 = arith.constant 9.99999974E-6 : f32
    %21 = vector.broadcast %cst_10 : f32 to vector<16x1xf32>
    %22 = arith.addf %18, %21 : vector<16x1xf32>
    %23 = math.rsqrt %22 : vector<16x1xf32>
    %24 = vector.broadcast %23 : vector<16x1xf32> to vector<16x128xf32>
    %25 = arith.mulf %20, %24 : vector<16x128xf32>
    %c0_11 = arith.constant 0 : index
    %c0_12 = arith.constant 0 : index
    %26 = vector.load %arg4[%c0_11, %c0_12] : memref<1x128xf32, #tpu.memory_space<vmem>>, vector<1x128xf32>
    %27 = vector.broadcast %26 : vector<1x128xf32> to vector<16x128xf32>
    %28 = arith.mulf %25, %27 : vector<16x128xf32>
    %c0_13 = arith.constant 0 : index
    %c0_14 = arith.constant 0 : index
    %29 = vector.load %arg5[%c0_13, %c0_14] : memref<1x128xf32, #tpu.memory_space<vmem>>, vector<1x128xf32>
    %30 = vector.broadcast %29 : vector<1x128xf32> to vector<16x128xf32>
    %31 = arith.addf %28, %30 : vector<16x128xf32>
    %cst_15 = arith.constant 0.000000e+00 : f32
    %32 = vector.broadcast %cst_15 : f32 to vector<16x128xf32>
    %33 = arith.maximumf %31, %32 : vector<16x128xf32>
    %34 = arith.truncf %33 : vector<16x128xf32> to vector<16x128xbf16>
    %c0_16 = arith.constant 0 : index
    %c0_17 = arith.constant 0 : index
    %35 = vector.load %arg6[%c0_16, %c0_17] : memref<128x128xbf16, #tpu.memory_space<vmem>>, vector<128x128xbf16>
    %cst_18 = arith.constant dense<0.000000e+00> : vector<16x128xf32>
    %36 = tpu.matmul %34, %35, %cst_18 {dimension_numbers = #tpu.dot_dimension_numbers<[1], [0], [0], [1], [0, 0, 1, 1], [], []>} : vector<16x128xbf16>, vector<128x128xbf16>, vector<16x128xf32> -> vector<16x128xf32>
    %c0_19 = arith.constant 0 : index
    %c0_20 = arith.constant 0 : index
    %37 = vector.load %arg7[%c0_19, %c0_20] : memref<1x128xf32, #tpu.memory_space<vmem>>, vector<1x128xf32>
    %38 = vector.broadcast %37 : vector<1x128xf32> to vector<16x128xf32>
    %39 = arith.addf %36, %38 : vector<16x128xf32>
    %cst_21 = arith.constant dense<0.000000e+00> : vector<16xf32>
    %40 = vector.multi_reduction <add>, %39, %cst_21 [1] : vector<16x128xf32> to vector<16xf32>
    %41 = vector.shape_cast %40 : vector<16xf32> to vector<16x1xf32>
    %cst_22 = arith.constant 1.562500e-02 : f32
    %42 = vector.broadcast %cst_22 : f32 to vector<16x1xf32>
    %43 = arith.mulf %41, %42 : vector<16x1xf32>
    %44 = arith.mulf %39, %39 : vector<16x128xf32>
    %cst_23 = arith.constant dense<0.000000e+00> : vector<16xf32>
    %45 = vector.multi_reduction <add>, %44, %cst_23 [1] : vector<16x128xf32> to vector<16xf32>
    %46 = vector.shape_cast %45 : vector<16xf32> to vector<16x1xf32>
    %cst_24 = arith.constant 1.562500e-02 : f32
    %47 = vector.broadcast %cst_24 : f32 to vector<16x1xf32>
    %48 = arith.mulf %46, %47 : vector<16x1xf32>
    %49 = arith.mulf %43, %43 : vector<16x1xf32>
    %50 = arith.subf %48, %49 : vector<16x1xf32>
    %cst_25 = arith.constant 0.000000e+00 : f32
    %51 = vector.broadcast %cst_25 : f32 to vector<16x1xf32>
    %52 = arith.maximumf %50, %51 : vector<16x1xf32>
    %53 = vector.broadcast %43 : vector<16x1xf32> to vector<16x128xf32>
    %54 = arith.subf %39, %53 : vector<16x128xf32>
    %cst_26 = arith.constant 9.99999974E-6 : f32
    %55 = vector.broadcast %cst_26 : f32 to vector<16x1xf32>
    %56 = arith.addf %52, %55 : vector<16x1xf32>
    %57 = math.rsqrt %56 : vector<16x1xf32>
    %58 = vector.broadcast %57 : vector<16x1xf32> to vector<16x128xf32>
    %59 = arith.mulf %54, %58 : vector<16x128xf32>
    %c0_27 = arith.constant 0 : index
    %c0_28 = arith.constant 0 : index
    %60 = vector.load %arg8[%c0_27, %c0_28] : memref<1x128xf32, #tpu.memory_space<vmem>>, vector<1x128xf32>
    %61 = vector.broadcast %60 : vector<1x128xf32> to vector<16x128xf32>
    %62 = arith.mulf %59, %61 : vector<16x128xf32>
    %c0_29 = arith.constant 0 : index
    %c0_30 = arith.constant 0 : index
    %63 = vector.load %arg9[%c0_29, %c0_30] : memref<1x128xf32, #tpu.memory_space<vmem>>, vector<1x128xf32>
    %64 = vector.broadcast %63 : vector<1x128xf32> to vector<16x128xf32>
    %65 = arith.addf %62, %64 : vector<16x128xf32>
    %cst_31 = arith.constant 0.000000e+00 : f32
    %66 = vector.broadcast %cst_31 : f32 to vector<16x128xf32>
    %67 = arith.maximumf %65, %66 : vector<16x128xf32>
    %68 = arith.truncf %67 : vector<16x128xf32> to vector<16x128xbf16>
    %c0_32 = arith.constant 0 : index
    %c0_33 = arith.constant 0 : index
    %69 = vector.load %arg13[%c0_32, %c0_33] : memref<16x128xf32, #tpu.memory_space<vmem>>, vector<16x128xf32>
    tpu.vector_store %arg13[%c0_32, %c0_33], %67 {strides = array<i32>} : memref<16x128xf32, #tpu.memory_space<vmem>>, vector<16x128xf32>,
    %c0_34 = arith.constant 0 : index
    %c0_35 = arith.constant 0 : index
    %70 = vector.load %arg10[%c0_34, %c0_35] : memref<128x128xbf16, #tpu.memory_space<vmem>>, vector<128x128xbf16>
    %cst_36 = arith.constant dense<0.000000e+00> : vector<16x128xf32>
    %71 = tpu.matmul %68, %70, %cst_36 {dimension_numbers = #tpu.dot_dimension_numbers<[1], [0], [0], [1], [0, 0, 1, 1], [], []>} : vector<16x128xbf16>, vector<128x128xbf16>, vector<16x128xf32> -> vector<16x128xf32>
    %c0_37 = arith.constant 0 : index
    %c0_38 = arith.constant 0 : index
    %72 = vector.load %arg11[%c0_37, %c0_38] : memref<1x128xf32, #tpu.memory_space<vmem>>, vector<1x128xf32>
    %73 = vector.broadcast %72 : vector<1x128xf32> to vector<16x128xf32>
    %74 = arith.addf %71, %73 : vector<16x128xf32>
    %c0_39 = arith.constant 0 : index
    %c0_40 = arith.constant 0 : index
    %75 = vector.load %arg12[%c0_39, %c0_40] : memref<16x128xf32, #tpu.memory_space<vmem>>, vector<16x128xf32>
    tpu.vector_store %arg12[%c0_39, %c0_40], %74 {strides = array<i32>} : memref<16x128xf32, #tpu.memory_space<vmem>>, vector<16x128xf32>,
    return
  }
  func.func @transform_0(%arg0: i32) -> (i32, i32) {
    %c0_i32 = arith.constant 0 : i32
    %c0_i32_0 = arith.constant 0 : i32
    return %arg0, %c0_i32 : i32, i32
  }
  func.func @transform_1(%arg0: i32) -> (i32, i32) {
    %c0_i32 = arith.constant 0 : i32
    %c0_i32_0 = arith.constant 0 : i32
    %c0_i32_1 = arith.constant 0 : i32
    return %c0_i32, %c0_i32_0 : i32, i32
  }
  func.func @transform_2(%arg0: i32) -> (i32, i32) {
    %c0_i32 = arith.constant 0 : i32
    %c0_i32_0 = arith.constant 0 : i32
    %c0_i32_1 = arith.constant 0 : i32
    return %c0_i32, %c0_i32_0 : i32, i32
  }
  func.func @transform_3(%arg0: i32) -> (i32, i32) {
    %c0_i32 = arith.constant 0 : i32
    %c0_i32_0 = arith.constant 0 : i32
    %c0_i32_1 = arith.constant 0 : i32
    return %c0_i32, %c0_i32_0 : i32, i32
  }
  func.func @transform_4(%arg0: i32) -> (i32, i32) {
    %c0_i32 = arith.constant 0 : i32
    %c0_i32_0 = arith.constant 0 : i32
    %c0_i32_1 = arith.constant 0 : i32
    return %c0_i32, %c0_i32_0 : i32, i32
  }
  func.func @transform_5(%arg0: i32) -> (i32, i32) {
    %c0_i32 = arith.constant 0 : i32
    %c0_i32_0 = arith.constant 0 : i32
    %c0_i32_1 = arith.constant 0 : i32
    return %c0_i32, %c0_i32_0 : i32, i32
  }
  func.func @transform_6(%arg0: i32) -> (i32, i32) {
    %c0_i32 = arith.constant 0 : i32
    %c0_i32_0 = arith.constant 0 : i32
    %c0_i32_1 = arith.constant 0 : i32
    return %c0_i32, %c0_i32_0 : i32, i32
  }
  func.func @transform_7(%arg0: i32) -> (i32, i32) {
    %c0_i32 = arith.constant 0 : i32
    %c0_i32_0 = arith.constant 0 : i32
    %c0_i32_1 = arith.constant 0 : i32
    return %c0_i32, %c0_i32_0 : i32, i32
  }
  func.func @transform_8(%arg0: i32) -> (i32, i32) {
    %c0_i32 = arith.constant 0 : i32
    %c0_i32_0 = arith.constant 0 : i32
    %c0_i32_1 = arith.constant 0 : i32
    return %c0_i32, %c0_i32_0 : i32, i32
  }
  func.func @transform_9(%arg0: i32) -> (i32, i32) {
    %c0_i32 = arith.constant 0 : i32
    %c0_i32_0 = arith.constant 0 : i32
    %c0_i32_1 = arith.constant 0 : i32
    return %c0_i32, %c0_i32_0 : i32, i32
  }
  func.func @transform_10(%arg0: i32) -> (i32, i32) {
    %c0_i32 = arith.constant 0 : i32
    %c0_i32_0 = arith.constant 0 : i32
    %c0_i32_1 = arith.constant 0 : i32
    return %c0_i32, %c0_i32_0 : i32, i32
  }
  func.func @transform_11(%arg0: i32) -> (i32, i32) {
    %c0_i32 = arith.constant 0 : i32
    %c0_i32_0 = arith.constant 0 : i32
    return %arg0, %c0_i32 : i32, i32
  }
  func.func @transform_12(%arg0: i32) -> (i32, i32) {
    %c0_i32 = arith.constant 0 : i32
    %c0_i32_0 = arith.constant 0 : i32
    return %arg0, %c0_i32 : i32, i32
  }
}

</mosaic_0001>

<bundles_post_ra>
// kernel: mlp_layernorm_forward_packed.1
= control target key start
LH: loop header
LB: loop body
LE: loop exit
PB: predicated region body
PF: predicated region fallthrough
CT: control target
= control target key end

     0   :  { %18 = vsyncpa [#allocation3], 0  ;;  %s908_s0 = inlined_call_operand.vmem [shape: bf16[16,128], index: 0, kind: input, shape index: {}]   ;;  %s909_s1 = inlined_call_operand.hbm [shape: bf16[128,128], index: 1, kind: input, shape index: {}]   ;;  %s910_s2 = inlined_call_operand.vmem [shape: f32[1,128], index: 2, kind: input, shape index: {}]   ;;  %s911_s3 = inlined_call_operand.vmem [shape: f32[1,128], index: 3, kind: input, shape index: {}]   ;;  %s912_s4 = inlined_call_operand.vmem [shape: f32[1,128], index: 4, kind: input, shape index: {}]   ;;  %s913_s5 = inlined_call_operand.hbm [shape: bf16[128,128], index: 5, kind: input, shape index: {}]   ;;  %s914_s6 = inlined_call_operand.vmem [shape: f32[1,128], index: 6, kind: input, shape index: {}]   ;;  %s915_s7 = inlined_call_operand.vmem [shape: f32[1,128], index: 7, kind: input, shape index: {}]   ;;  %s916_s8 = inlined_call_operand.vmem [shape: f32[1,128], index: 8, kind: input, shape index: {}]   ;;  %s917_s9 = inlined_call_operand.hbm [shape: bf16[128,128], index: 9, kind: input, shape index: {}]   ;;  %s918_s10 = inlined_call_operand.vmem [shape: f32[1,128], index: 10, kind: input, shape index: {}]   ;;  %s919_s11 = inlined_call_operand.vmem [shape: f32[16,128], index: 11, kind: output, shape index: {0}]   ;;  %s920_s12 = inlined_call_operand.vmem [shape: f32[16,128], index: 12, kind: output, shape index: {1}]  }
   0x1   :  { %19 = vsyncpa [#allocation5], 0  ;;  %s761_s21 = smov [#allocation4]   ;;  %s762_s23 = smov [#allocation2]  }
   0x2   :  { %s45_s22 = sshll.u32 %s761_s21, 4  ;;  %s27_s24 = sshll.u32 %s762_s23, 4  ;;  %s46_s22 = int_to_ptr.vmem [resolvable:$true] %s45_s22  ;;  %s28_s24 = int_to_ptr.vmem [resolvable:$true] %s27_s24 }
   0x3   :  { %s705_s25 = scalar_lea.vmem %s46_s22, 1024  ;;  %p710_p1 = scmp.lt.s32.totalorder %s46_s22, %s46_s22 }
   0x4   :  { %p706_p0 = scmp.ne.s32.totalorder %s46_s22, %s705_s25  ;;  %p711_p2 = scmp.lt.s32.totalorder %s705_s25, %s705_s25 }
   0x6   :  { %p712_p3 = por %p711_p2, %p710_p1 }
   0x8   :  { %p713_p4 = pnand %p712_p3, %p706_p0 }
   0xa   :  { %716 = shalt.err (!%p713_p4)
}
   0xb   :  { %s763_s26 = smov 64   ;;  %s764_s27 = smov 4  }
   0xc   :  { %51 = dma.hbm_to_vmem [thread:$0]  %s913_s5, 1024, %s46_s22, [#allocation5], %s763_s26, %s763_s26, %s764_s27  }
   0xd   :  { %s725_s30 = scalar_lea.vmem %s28_s24, 1024  ;;  %p730_p6 = scmp.lt.s32.totalorder %s28_s24, %s28_s24 }
   0xe   :  { %p726_p5 = scmp.ne.s32.totalorder %s28_s24, %s725_s30  ;;  %p731_p7 = scmp.lt.s32.totalorder %s725_s30, %s725_s30 }
  0x10   :  { %p732_p8 = por %p731_p7, %p730_p6 }
  0x12   :  { %p733_p9 = pnand %p732_p8, %p726_p5 }
  0x14   :  { %736 = shalt.err (!%p733_p9)
}
  0x15   :  { %33 = dma.hbm_to_vmem [thread:$0]  %s909_s1, 1024, %s28_s24, [#allocation3], %s763_s26, %s763_s26, %s764_s27  }
  0x16   :  { %s765_s15 = smov [#allocation6]  }
  0x17   :  { %s63_s16 = sshll.u32 %s765_s15, 4  ;;  %s64_s16 = int_to_ptr.vmem [resolvable:$true] %s63_s16 }
  0x18   :  { %s745_s17 = scalar_lea.vmem %s64_s16, 1024  ;;  %p750_p11 = scmp.lt.s32.totalorder %s64_s16, %s64_s16 }
  0x19   :  { %p746_p10 = scmp.ne.s32.totalorder %s64_s16, %s745_s17  ;;  %p751_p12 = scmp.lt.s32.totalorder %s745_s17, %s745_s17 }
  0x1b   :  { %p752_p13 = por %p751_p12, %p750_p11 }
  0x1d   :  { %p753_p0 = pnand %p752_p13, %p746_p10 }
  0x1f   :  { %756 = shalt.err (!%p753_p0)
}
  0x20   :  { %69 = dma.hbm_to_vmem [thread:$0]  %s917_s9, 1024, %s64_s16, [#allocation5], %s763_s26, %s763_s26, %s764_s27  }
  0x21   :  { %757 = dma.done.wait [#allocation3], 1024  }
  0x22   :  { %758 = vsyncadd [#allocation3], 4294966272 }
  0x23   :  { %759 = dma.done.wait [#allocation5], 2048  }
  0x24   :  { %760 = vsyncadd [#allocation5], 4294965248  ;;  %v766_v0 = vmov 0.0   ;;  %vm767_vm0 = vmmov 0   ;;  %v664_v1 = vld [vmem:[#allocation2 + $0x38] sm:$0xff]   ;;  %v665_v2 = vld [vmem:[#allocation2 + $0x30] sm:$0xff]  }
  0x25   :  { %597 = vmatprep.subr.bf16.mxu0 %v766_v0  ;;  %613 = vmatprep.mubr.msk.bf16.mxu0 %vm767_vm0, %v766_v0  ;;  %v666_v3 = vld [vmem:[#allocation2 + $0x28] sm:$0xff]   ;;  %v667_v4 = vld [vmem:[#allocation2 + $0x20] sm:$0xff]   ;;  %v668_v5 = vld [vmem:[#allocation2 + $0x18] sm:$0xff]  }
  0x26   :  { %617 = vmatprep.subr.bf16.mxu1 %v766_v0  ;;  %633 = vmatprep.mubr.msk.bf16.mxu1 %vm767_vm0, %v766_v0  ;;  %v669_v6 = vld [vmem:[#allocation2 + $0x10] sm:$0xff]   ;;  %v670_v7 = vld [vmem:[#allocation2 + $0x8] sm:$0xff]   ;;  %v671_v8 = vld [vmem:[#allocation2] sm:$0xff]  }
  0x27   :  { %598 = vmatpush3.bf16.msra.mxu0 %v664_v1  ;;  %v672_v9 = vld [vmem:[%s908_s0] sm:$0xff]   ;;  %v673_v19 = vld [vmem:[#allocation4 + $0x38] sm:$0xff]   ;;  %v674_v20 = vld [vmem:[#allocation4 + $0x30] sm:$0xff]  }
  0x28   :  { %599 = vmatprep.subr.bf16.mxu0 %v766_v0  ;;  %v538_v10 = vld [vmem:[%s910_s2] ss:$0 sm:$0xff]  ;;  %618 = vmatpush3.bf16.msra.mxu1 %v673_v19  ;;  %v675_v21 = vld [vmem:[#allocation4 + $0x28] sm:$0xff]   ;;  %v677_v23 = vld [vmem:[#allocation4 + $0x18] sm:$0xff]  }
  0x29   :  { %619 = vmatprep.subr.bf16.mxu1 %v766_v0  ;;  %v676_v22 = vld [vmem:[#allocation4 + $0x20] sm:$0xff]   ;;  %v678_v24 = vld [vmem:[#allocation4 + $0x10] sm:$0xff]   ;;  %v679_v25 = vld [vmem:[#allocation4 + $0x8] sm:$0xff]  }
  0x2a   :  { %v680_v26 = vld [vmem:[#allocation4] sm:$0xff]  }
  0x2b   :  { %600 = vmatpush3.bf16.msra.mxu0 %v665_v2  ;;  %v548_v45 = vld [vmem:[%s911_s3] ss:$0 sm:$0xff] }
  0x2c   :  { %601 = vmatprep.subr.bf16.mxu0 %v766_v0  ;;  %620 = vmatpush3.bf16.msra.mxu1 %v674_v20  ;;  %v549_v50 = vld [vmem:[%s912_s4] ss:$0 sm:$0xff] }
  0x2d   :  { %621 = vmatprep.subr.bf16.mxu1 %v766_v0  ;;  %v550_v58 = vld [vmem:[%s914_s6] ss:$0 sm:$0xff] }
  0x2f   :  { %602 = vmatpush3.bf16.msra.mxu0 %v666_v3 }
  0x30   :  { %603 = vmatprep.subr.bf16.mxu0 %v766_v0  ;;  %622 = vmatpush3.bf16.msra.mxu1 %v675_v21 }
  0x31   :  { %623 = vmatprep.subr.bf16.mxu1 %v766_v0 }
  0x33   :  { %604 = vmatpush3.bf16.msra.mxu0 %v667_v4  ;;  %v681_v4 = vld [vmem:[#allocation6 + $0x38] sm:$0xff]  }
  0x34   :  { %605 = vmatprep.subr.bf16.mxu0 %v766_v0  ;;  %624 = vmatpush3.bf16.msra.mxu1 %v676_v22 }
  0x35   :  { %625 = vmatprep.subr.bf16.mxu1 %v766_v0 }
  0x37   :  { %606 = vmatpush3.bf16.msra.mxu0 %v668_v5  ;;  %v682_v5 = vld [vmem:[#allocation6 + $0x30] sm:$0xff]  }
  0x38   :  { %607 = vmatprep.subr.bf16.mxu0 %v766_v0  ;;  %626 = vmatpush3.bf16.msra.mxu1 %v677_v23 }
  0x39   :  { %627 = vmatprep.subr.bf16.mxu1 %v766_v0 }
  0x3b   :  { %608 = vmatpush3.bf16.msra.mxu0 %v669_v6  ;;  %v683_v6 = vld [vmem:[#allocation6 + $0x28] sm:$0xff]  }
  0x3c   :  { %609 = vmatprep.subr.bf16.mxu0 %v766_v0  ;;  %628 = vmatpush3.bf16.msra.mxu1 %v678_v24 }
  0x3d   :  { %629 = vmatprep.subr.bf16.mxu1 %v766_v0 }
  0x3f   :  { %610 = vmatpush3.bf16.msra.mxu0 %v670_v7  ;;  %v684_v7 = vld [vmem:[#allocation6 + $0x20] sm:$0xff]  }
  0x40   :  { %611 = vmatprep.subr.bf16.mxu0 %v766_v0  ;;  %630 = vmatpush3.bf16.msra.mxu1 %v679_v25 }
  0x41   :  { %631 = vmatprep.subr.bf16.mxu1 %v766_v0 }
  0x43   :  { %612 = vmatpush3.bf16.msra.mxu0 %v671_v8  ;;  %v685_v8 = vld [vmem:[#allocation6 + $0x18] sm:$0xff]  }
  0x44   :  { %637 = vmatprep.subr.bf16.mxu0 %v766_v0  ;;  %632 = vmatpush3.bf16.msra.mxu1 %v680_v26 }
  0x46   :  { %614 = vmatmul.mubr.bf16.vlgmr.msra.gmra.mxu0 %v672_v9  ;;  %v686_v9 = vld [vmem:[#allocation6 + $0x10] sm:$0xff]  }
  0x47   :  { %653 = vmatprep.mubr.msk.bf16.mxu0 %vm767_vm0, %v766_v0  ;;  %638 = vmatpush3.bf16.msra.mxu0 %v681_v4 }
  0x48   :  { %639 = vmatprep.subr.bf16.mxu0 %v766_v0 }
  0x4b   :  { %640 = vmatpush3.bf16.msra.mxu0 %v682_v5 }
  0x4c   :  { %641 = vmatprep.subr.bf16.mxu0 %v766_v0 }
  0x4f   :  { %642 = vmatpush3.bf16.msra.mxu0 %v683_v6 }
  0x50   :  { %643 = vmatprep.subr.bf16.mxu0 %v766_v0 }
  0x53   :  { %644 = vmatpush3.bf16.msra.mxu0 %v684_v7 }
  0x54   :  { %645 = vmatprep.subr.bf16.mxu0 %v766_v0 }
  0x57   :  { %646 = vmatpush3.bf16.msra.mxu0 %v685_v8 }
  0x58   :  { %647 = vmatprep.subr.bf16.mxu0 %v766_v0 }
  0x5b   :  { %648 = vmatpush3.bf16.msra.mxu0 %v686_v9 }
  0x5c   :  { %649 = vmatprep.subr.bf16.mxu0 %v766_v0 }
 0x106   :  { %v195_v11 = vpop.f32.mrf.mxu0 }
 0x107   :  { %v196_v12 = vadd.f32 %v538_v10, %v195_v11  ;;  %v688_v11 = vld [vmem:[#allocation6] sm:$0xff]  }
 0x108   :  { %v615_v13 = vpop.f32.mrf.mxu0 }
 0x109   :  { %202 = vadd.xlane.f32.xlu0 %v196_v12  ;;  %v208_v14 = vmul.f32 %v196_v12, %v196_v12 }
 0x10a   :  { %v198_v15 = vpop.f32.mrf.mxu0 }
 0x10b   :  { %v199_v16 = vadd.f32 %v538_v10, %v198_v15  ;;  %210 = vadd.xlane.f32.xlu1 %v208_v14  ;;  %v687_v10 = vld [vmem:[#allocation6 + $0x8] sm:$0xff]  }
 0x10c   :  { %v616_v17 = vpop.f32.mrf.mxu0  ;;  %650 = vmatpush3.bf16.msra.mxu0 %v687_v10 }
 0x10d   :  { %204 = vadd.xlane.f32.xlu0 %v199_v16  ;;  %v209_v18 = vmul.f32 %v199_v16, %v199_v16  ;;  %651 = vmatprep.subr.bf16.mxu0 %v766_v0 }
 0x10f   :  { %212 = vadd.xlane.f32.xlu1 %v209_v18 }
 0x110   :  { %652 = vmatpush3.bf16.msra.mxu0 %v688_v11 }
 0x192   :  { %v203_v27 = vpop.xlane.xlu0 %202 }
 0x193   :  { %v206_v28 = vmul.f32 0.015625, %v203_v27 }
 0x194   :  { %v211_v29 = vpop.xlane.xlu1 %210 }
 0x195   :  { %v216_v30 = vmul.f32 %v206_v28, %v206_v28  ;;  %v214_v31 = vmul.f32 0.015625, %v211_v29  ;;  %v222_v43 = vsub.f32 %v196_v12, %v206_v28  ;;  %v559_v29 = vld [vmem:[%s915_s7] ss:$0 sm:$0xff] }
 0x196   :  { %v205_v32 = vpop.xlane.xlu0 %204 }
 0x197   :  { %v218_v33 = vsub.f32 %v214_v31, %v216_v30  ;;  %v207_v34 = vmul.f32 0.015625, %v205_v32  ;;  %v560_v31 = vld [vmem:[%s916_s8] ss:$0 sm:$0xff] }
 0x198   :  { %v213_v35 = vpop.xlane.xlu1 %212 }
 0x199   :  { %v220_v36 = vmax.f32 %v218_v33, 0.0  ;;  %v217_v37 = vmul.f32 %v207_v34, %v207_v34  ;;  %v215_v38 = vmul.f32 0.015625, %v213_v35  ;;  %v223_v47 = vsub.f32 %v199_v16, %v207_v34 }
 0x19b   :  { %v224_v39 = vadd.f32 1e-05, %v220_v36  ;;  %v219_v40 = vsub.f32 %v215_v38, %v217_v37 }
 0x19d   :  { %689 = vrsqrt.f32 %v224_v39  ;;  %v221_v41 = vmax.f32 %v219_v40, 0.0 }
 0x19f   :  { %v225_v42 = vadd.f32 1e-05, %v221_v41 }
 0x1a1   :  { %691 = vrsqrt.f32 %v225_v42  ;;  %v561_v42 = vld [vmem:[%s918_s10] ss:$0 sm:$0xff] }
 0x1aa   :  { %v690_v44 = vpop.eup %689 }
 0x1ab   :  { %v228_v46 = vmul.f32 %v690_v44, %v222_v43 }
 0x1ad   :  { %v237_v48 = vmul.f32 %v548_v45, %v228_v46 }
 0x1ae   :  { %v692_v49 = vpop.eup %691 }
 0x1af   :  { %v229_v51 = vmul.f32 %v692_v49, %v223_v47  ;;  %v246_v53 = vadd.f32 %v549_v50, %v237_v48 }
 0x1b1   :  { %v238_v52 = vmul.f32 %v548_v45, %v229_v51  ;;  %v248_v55 = vmax.f32 %v246_v53, 0.0 }
 0x1b3   :  { %v247_v54 = vadd.f32 %v549_v50, %v238_v52 }
 0x1b5   :  { %v249_v56 = vmax.f32 %v247_v54, 0.0 }
 0x1b7   :  { %v250_v57 = vpack.c.bf16 %v249_v56, %v248_v55 }
 0x1b9   :  { %634 = vmatmul.mubr.bf16.vlgmr.msra.gmra.mxu1 %v250_v57 }
 0x279   :  { %v356_v59 = vpop.f32.mrf.mxu1 }
 0x27a   :  { %v357_v60 = vadd.f32 %v550_v58, %v356_v59 }
 0x27b   :  { %v635_v61 = vpop.f32.mrf.mxu1 }
 0x27c   :  { %363 = vadd.xlane.f32.xlu0 %v357_v60  ;;  %v369_v1 = vmul.f32 %v357_v60, %v357_v60 }
 0x27d   :  { %v359_v62 = vpop.f32.mrf.mxu1 }
 0x27e   :  { %v360_v63 = vadd.f32 %v550_v58, %v359_v62 }
 0x27f   :  { %v636_v2 = vpop.f32.mrf.mxu1 }
 0x280   :  { %371 = vadd.xlane.f32.xlu0 %v369_v1  ;;  %365 = vadd.xlane.f32.xlu1 %v360_v63  ;;  %v370_v3 = vmul.f32 %v360_v63, %v360_v63 }
 0x284   :  { %373 = vadd.xlane.f32.xlu1 %v370_v3 }
 0x305   :  { %v364_v12 = vpop.xlane.xlu0 %363 }
 0x306   :  { %v367_v13 = vmul.f32 0.015625, %v364_v12 }
 0x308   :  { %v377_v16 = vmul.f32 %v367_v13, %v367_v13  ;;  %v383_v0 = vsub.f32 %v357_v60, %v367_v13 }
 0x309   :  { %v372_v14 = vpop.xlane.xlu0 %371  ;;  %v366_v15 = vpop.xlane.xlu1 %365 }
 0x30a   :  { %v375_v17 = vmul.f32 0.015625, %v372_v14  ;;  %v368_v18 = vmul.f32 0.015625, %v366_v15 }
 0x30c   :  { %v379_v19 = vsub.f32 %v375_v17, %v377_v16  ;;  %v378_v22 = vmul.f32 %v368_v18, %v368_v18  ;;  %v384_v32 = vsub.f32 %v360_v63, %v368_v18 }
 0x30d   :  { %v374_v20 = vpop.xlane.xlu1 %373 }
 0x30e   :  { %v381_v21 = vmax.f32 %v379_v19, 0.0  ;;  %v376_v23 = vmul.f32 0.015625, %v374_v20 }
 0x310   :  { %v385_v24 = vadd.f32 1e-05, %v381_v21  ;;  %v380_v25 = vsub.f32 %v376_v23, %v378_v22 }
 0x312   :  { %693 = vrsqrt.f32 %v385_v24  ;;  %v382_v26 = vmax.f32 %v380_v25, 0.0 }
 0x314   :  { %v386_v27 = vadd.f32 1e-05, %v382_v26 }
 0x316   :  { %695 = vrsqrt.f32 %v386_v27 }
 0x31f   :  { %v694_v28 = vpop.eup %693 }
 0x320   :  { %v389_v30 = vmul.f32 %v694_v28, %v383_v0 }
 0x322   :  { %v398_v33 = vmul.f32 %v559_v29, %v389_v30 }
 0x323   :  { %v696_v34 = vpop.eup %695 }
 0x324   :  { %v390_v35 = vmul.f32 %v696_v34, %v384_v32  ;;  %v407_v36 = vadd.f32 %v560_v31, %v398_v33 }
 0x326   :  { %v399_v37 = vmul.f32 %v559_v29, %v390_v35  ;;  %v409_v38 = vmax.f32 %v407_v36, 0.0 }
 0x328   :  { %v408_v39 = vadd.f32 %v560_v31, %v399_v37  ;;  %412 = vst [vmem:[%s920_s12] sm:$0xff] %v409_v38 }
 0x32a   :  { %v410_v40 = vmax.f32 %v408_v39, 0.0 }
 0x32c   :  { %v411_v41 = vpack.c.bf16 %v410_v40, %v409_v38  ;;  %413 = vst [vmem:[%s920_s12 + $0x8] sm:$0xff] %v410_v40 }
 0x32e   :  { %654 = vmatmul.mubr.bf16.vlgmr.msra.gmra.mxu0 %v411_v41 }
 0x3ee   :  { %v519_v43 = vpop.f32.mrf.mxu0 }
 0x3ef   :  { %v520_v44 = vadd.f32 %v561_v42, %v519_v43 }
 0x3f0   :  { %v655_v45 = vpop.f32.mrf.mxu0 }
 0x3f1   :  { %526 = vst [vmem:[%s919_s11] sm:$0xff] %v520_v44 }
 0x3f2   :  { %v522_v46 = vpop.f32.mrf.mxu0 }
 0x3f3   :  { %v523_v47 = vadd.f32 %v561_v42, %v522_v46 }
 0x3f4   :  { %v656_v48 = vpop.f32.mrf.mxu0 }
 0x3f5   :  { %527 = vst [vmem:[%s919_s11 + $0x8] sm:$0xff] %v523_v47 }
 0x3f6   :  { %536 = vsyncpa [#allocation3], 1 }
 0x3f7   :  { %537 = vsyncpa [#allocation5], 1 }

</bundles_post_ra>
